<compile_context>
chip_gen: v6e
topology: v6e:2x2x1
jax: 0.10.0
libtpu: 0.0.40
codegen_flags: <defaults>
</compile_context>

<pallas_src>
import functools

import jax
import jax.numpy as jnp
import numpy as np
from jax.experimental import pallas as pl
from jax.experimental.pallas import tpu as pltpu


def _build_kernel(*, has_mask, reduce_loss, inv2dx, inv2dy):
    """Returns a kernel body with the right signature for the variant."""

    def _core(sdf_ref, mask_ref, grad_ref, loss_ref, acc_ref):
        x = sdf_ref[...].astype(jnp.float32)  # (TC, H, W)

        # Replicate-edge central differences, formed in-kernel.
        x_hm = jnp.concatenate([x[:, :1, :], x[:, :-1, :]], axis=1)   # x[h-1]
        x_hp = jnp.concatenate([x[:, 1:, :], x[:, -1:, :]], axis=1)   # x[h+1]
        x_wm = jnp.concatenate([x[:, :, :1], x[:, :, :-1]], axis=2)   # x[w-1]
        x_wp = jnp.concatenate([x[:, :, 1:], x[:, :, -1:]], axis=2)   # x[w+1]

        dfdx = (x_hp - x_hm) * inv2dx
        dfdy = (x_wp - x_wm) * inv2dy
        g = jnp.sqrt(dfdx * dfdx + dfdy * dfdy)
        grad_ref[...] = g.astype(grad_ref.dtype)

        if has_mask:
            m = (mask_ref[...] != 0).astype(jnp.float32)  # cast in-kernel (free VPU)
            sq = (g - m) ** 2
        else:
            sq = (g - 1.0) ** 2

        if reduce_loss:
            i = pl.program_id(0)

            @pl.when(i == 0)
            def _():
                acc_ref[...] = jnp.zeros_like(acc_ref)

            acc_ref[...] += sq  # element-wise VPU accumulation only

            @pl.when(i == pl.num_programs(0) - 1)
            def _():
                # single cross-lane/sublane reduction + (1,1) store at the end
                loss_ref[...] = jnp.zeros_like(loss_ref) + jnp.sum(acc_ref[...])
        else:
            loss_ref[...] = sq.astype(loss_ref.dtype)

    if has_mask and reduce_loss:
        def kernel(s, m, g, l, a):
            _core(s, m, g, l, a)
    elif has_mask:
        def kernel(s, m, g, l):
            _core(s, m, g, l, None)
    elif reduce_loss:
        def kernel(s, g, l, a):
            _core(s, None, g, l, a)
    else:
        def kernel(s, g, l):
            _core(s, None, g, l, None)
    return kernel


def _pick_channels_per_step(bc, h, w, max_block_bytes=4 * 1024 * 1024):
    """Largest divisor of B*C whose f32 slab block stays within budget."""
    per_slab = h * w * 4
    cap = max(1, max_block_bytes // per_slab)
    tc = 1
    for d in range(1, bc + 1):
        if bc % d == 0 and d <= cap:
            tc = d
    return tc


def eikonal_regularizer(sdf, mask=None, *, spacing=(1.0, 1.0), reduction="mean"):
    """Pallas port of EikonalRegularizer.forward for 4D NCHW inputs."""
    if len(spacing) != 2 or sdf.ndim != 4:
        raise ValueError("This Pallas port implements the 4D (NCHW) case only.")
    if reduction not in ("none", "mean", "sum"):
        raise ValueError(f"bad reduction: {reduction}")

    B, C, H, W = sdf.shape
    BC = B * C
    has_mask = mask is not None

    sdf3 = sdf.reshape(BC, H, W)
    operands = [sdf3]

    if has_mask:
        if mask.shape != sdf.shape:
            raise ValueError("mask must have the same shape as sdf")
        mask3 = mask
        if mask3.dtype == jnp.bool_:
            mask3 = mask3.astype(jnp.int8)  # 1 B/elem HBM stream; f32 cast in-kernel
        mask3 = mask3.reshape(BC, H, W)
        operands.append(mask3)

    TC = _pick_channels_per_step(BC, H, W)
    grid = (BC // TC,)

    inv2dx = 0.5 / float(spacing[0])
    inv2dy = 0.5 / float(spacing[1])
    reduce_loss = reduction != "none"

    slab_spec = pl.BlockSpec((TC, H, W), lambda i: (i, 0, 0))
    in_specs = [slab_spec] + ([slab_spec] if has_mask else [])
    grad_spec = slab_spec

    if reduce_loss:
        out_shape = (
            jax.ShapeDtypeStruct((BC, H, W), jnp.float32),
            jax.ShapeDtypeStruct((1, 1), jnp.float32),  # resident accumulator
        )
        out_specs = (grad_spec, pl.BlockSpec((1, 1), lambda i: (0, 0)))
        scratch_shapes = [pltpu.VMEM((TC, H, W), jnp.float32)]
        dim_sem = ("arbitrary",)  # sequential: resident scalar accumulator
    else:
        out_shape = (
            jax.ShapeDtypeStruct((BC, H, W), jnp.float32),
            jax.ShapeDtypeStruct((BC, H, W), jnp.float32),
        )
        out_specs = (grad_spec, slab_spec)
        scratch_shapes = []
        dim_sem = ("parallel",)

    kernel = _build_kernel(
        has_mask=has_mask, reduce_loss=reduce_loss, inv2dx=inv2dx, inv2dy=inv2dy
    )

    grad3, loss = pl.pallas_call(
        kernel,
        grid=grid,
        in_specs=in_specs,
        out_specs=out_specs,
        out_shape=out_shape,
        scratch_shapes=scratch_shapes,
        compiler_params=pltpu.CompilerParams(
            dimension_semantics=dim_sem,
            vmem_limit_bytes=48 * 1024 * 1024,
        ),
    )(*operands)

    grad_norm = grad3.reshape(B, C, H, W)
    if reduction == "mean":
        loss = loss[0, 0] / (B * C * H * W)
    elif reduction == "sum":
        loss = loss[0, 0]
    else:
        loss = loss.reshape(B, C, H, W)
    return loss, grad_norm


def _reference(sdf, mask, dx, dy, reduction):
    """Pure-JAX reference mirroring the PyTorch module (4D case)."""
    if mask is None:
        masking = jnp.ones_like(sdf, dtype=jnp.float32)
    else:
        masking = mask.astype(jnp.bool_).astype(jnp.float32)
    p = jnp.pad(sdf.astype(jnp.float32), ((0, 0), (0, 0), (1, 1), (1, 1)), mode="edge")
    dfdx = (p[:, :, 2:, 1:-1] - p[:, :, :-2, 1:-1]) / (2.0 * dx)
    dfdy = (p[:, :, 1:-1, 2:] - p[:, :, 1:-1, :-2]) / (2.0 * dy)
    g = jnp.sqrt(dfdx**2 + dfdy**2)
    sq = (g - masking) ** 2
    if reduction == "mean":
        return sq.mean(), g
    if reduction == "sum":
        return sq.sum(), g
    return sq, g


if __name__ == "__main__":
    key = jax.random.PRNGKey(0)
    k1, k2 = jax.random.split(key)
    B, C, H, W = 2, 4, 16, 16
    sdf = jax.random.normal(k1, (B, C, H, W), dtype=jnp.float32)
    mask = jax.random.bernoulli(k2, 0.5, (B, C, H, W))  # bool mask
    spacing = (0.5, 0.25)

    # 1) default path: mask=None, reduction='mean'
    loss, grad_norm = eikonal_regularizer(sdf, spacing=spacing, reduction="mean")
    jax.block_until_ready((loss, grad_norm))
    ref_loss, ref_grad = _reference(sdf, None, spacing[0], spacing[1], "mean")
    np.testing.assert_allclose(np.asarray(grad_norm), np.asarray(ref_grad),
                               rtol=1e-5, atol=1e-5)
    np.testing.assert_allclose(np.asarray(loss), np.asarray(ref_loss),
                               rtol=1e-5, atol=1e-5)

    # 2) provided bool mask, reduction='sum'
    loss, grad_norm = eikonal_regularizer(sdf, mask, spacing=spacing, reduction="sum")
    jax.block_until_ready((loss, grad_norm))
    ref_loss, ref_grad = _reference(sdf, mask, spacing[0], spacing[1], "sum")
    np.testing.assert_allclose(np.asarray(grad_norm), np.asarray(ref_grad),
                               rtol=1e-5, atol=1e-5)
    np.testing.assert_allclose(np.asarray(loss), np.asarray(ref_loss),
                               rtol=1e-4, atol=1e-4)

    # 3) reduction='none'
    loss, grad_norm = eikonal_regularizer(sdf, mask, spacing=spacing, reduction="none")
    jax.block_until_ready((loss, grad_norm))
    ref_loss, ref_grad = _reference(sdf, mask, spacing[0], spacing[1], "none")
    np.testing.assert_allclose(np.asarray(grad_norm), np.asarray(ref_grad),
                               rtol=1e-5, atol=1e-5)
    np.testing.assert_allclose(np.asarray(loss), np.asarray(ref_loss),
                               rtol=1e-5, atol=1e-5)

    print("KERNEL_OK")
</pallas_src>

<mosaic_0001>
module attributes {stable_mosaic.version = 11 : i64} {
  func.func @kernel(%arg0: i32, %arg1: memref<8x16x16xf32, #tpu.memory_space<vmem>>, %arg2: memref<8x16x16xf32, #tpu.memory_space<vmem>>, %arg3: memref<1x1xf32, #tpu.memory_space<vmem>>, %arg4: memref<8x16x16xf32, #tpu.memory_space<vmem>>) attributes {dimension_semantics = [#tpu.dimension_semantics<arbitrary>], iteration_bounds = array<i64: 1>, scalar_prefetch = 0 : i64, scratch_operands = 1 : i64, tpu.core_type = #tpu.core_type<tc>, window_params = [{transform_indices = @transform_0, window_bounds = array<i64: 8, 16, 16>}, {transform_indices = @transform_1, window_bounds = array<i64: 8, 16, 16>}, {pipeline_mode = #tpu.pipeline_mode<synchronous>, transform_indices = @transform_2, window_bounds = array<i64: 1, 1>}]} {
    %c0 = arith.constant 0 : index
    %c0_0 = arith.constant 0 : index
    %c0_1 = arith.constant 0 : index
    %0 = vector.load %arg1[%c0, %c0_0, %c0_1] : memref<8x16x16xf32, #tpu.memory_space<vmem>>, vector<8x16x16xf32>
    %1 = vector.extract_strided_slice %0 {offsets = [0, 0, 0], sizes = [8, 1, 16], strides = [1, 1, 1]} : vector<8x16x16xf32> to vector<8x1x16xf32>
    %2 = vector.extract_strided_slice %0 {offsets = [0, 0, 0], sizes = [8, 15, 16], strides = [1, 1, 1]} : vector<8x16x16xf32> to vector<8x15x16xf32>
    %3 = tpu.concatenate %1, %2 in 1 : vector<8x1x16xf32>, vector<8x15x16xf32> -> vector<8x16x16xf32>
    %4 = vector.extract_strided_slice %0 {offsets = [0, 1, 0], sizes = [8, 15, 16], strides = [1, 1, 1]} : vector<8x16x16xf32> to vector<8x15x16xf32>
    %5 = vector.extract_strided_slice %0 {offsets = [0, 15, 0], sizes = [8, 1, 16], strides = [1, 1, 1]} : vector<8x16x16xf32> to vector<8x1x16xf32>
    %6 = tpu.concatenate %4, %5 in 1 : vector<8x15x16xf32>, vector<8x1x16xf32> -> vector<8x16x16xf32>
    %7 = vector.extract_strided_slice %0 {offsets = [0, 0, 0], sizes = [8, 16, 1], strides = [1, 1, 1]} : vector<8x16x16xf32> to vector<8x16x1xf32>
    %8 = vector.extract_strided_slice %0 {offsets = [0, 0, 0], sizes = [8, 16, 15], strides = [1, 1, 1]} : vector<8x16x16xf32> to vector<8x16x15xf32>
    %9 = tpu.concatenate %7, %8 in 2 : vector<8x16x1xf32>, vector<8x16x15xf32> -> vector<8x16x16xf32>
    %10 = vector.extract_strided_slice %0 {offsets = [0, 0, 1], sizes = [8, 16, 15], strides = [1, 1, 1]} : vector<8x16x16xf32> to vector<8x16x15xf32>
    %11 = vector.extract_strided_slice %0 {offsets = [0, 0, 15], sizes = [8, 16, 1], strides = [1, 1, 1]} : vector<8x16x16xf32> to vector<8x16x1xf32>
    %12 = tpu.concatenate %10, %11 in 2 : vector<8x16x15xf32>, vector<8x16x1xf32> -> vector<8x16x16xf32>
    %13 = arith.subf %6, %3 : vector<8x16x16xf32>
    %cst = arith.constant 1.000000e+00 : f32
    %14 = vector.broadcast %cst : f32 to vector<8x16x16xf32>
    %15 = arith.mulf %13, %14 : vector<8x16x16xf32>
    %16 = arith.subf %12, %9 : vector<8x16x16xf32>
    %cst_2 = arith.constant 2.000000e+00 : f32
    %17 = vector.broadcast %cst_2 : f32 to vector<8x16x16xf32>
    %18 = arith.mulf %16, %17 : vector<8x16x16xf32>
    %19 = arith.mulf %15, %15 : vector<8x16x16xf32>
    %20 = arith.mulf %18, %18 : vector<8x16x16xf32>
    %21 = arith.addf %19, %20 : vector<8x16x16xf32>
    %22 = math.sqrt %21 : vector<8x16x16xf32>
    %c0_3 = arith.constant 0 : index
    %c0_4 = arith.constant 0 : index
    %c0_5 = arith.constant 0 : index
    %23 = vector.load %arg2[%c0_3, %c0_4, %c0_5] : memref<8x16x16xf32, #tpu.memory_space<vmem>>, vector<8x16x16xf32>
    tpu.vector_store %arg2[%c0_3, %c0_4, %c0_5], %22 {strides = array<i32>} : memref<8x16x16xf32, #tpu.memory_space<vmem>>, vector<8x16x16xf32>,
    %cst_6 = arith.constant 1.000000e+00 : f32
    %24 = vector.broadcast %cst_6 : f32 to vector<8x16x16xf32>
    %25 = arith.subf %22, %24 : vector<8x16x16xf32>
    %26 = arith.mulf %25, %25 : vector<8x16x16xf32>
    %c0_i32 = arith.constant 0 : i32
    %27 = arith.cmpi eq, %arg0, %c0_i32 : i32
    %28 = arith.extui %27 : i1 to i32
    %c0_i32_7 = arith.constant 0 : i32
    %29 = arith.cmpi ne, %28, %c0_i32_7 : i32
    scf.if %29 {
      %cst_16 = arith.constant 0.000000e+00 : f32
      %36 = vector.broadcast %cst_16 : f32 to vector<8x16x16xf32>
      %c0_17 = arith.constant 0 : index
      %c0_18 = arith.constant 0 : index
      %c0_19 = arith.constant 0 : index
      %37 = vector.load %arg4[%c0_17, %c0_18, %c0_19] : memref<8x16x16xf32, #tpu.memory_space<vmem>>, vector<8x16x16xf32>
      tpu.vector_store %arg4[%c0_17, %c0_18, %c0_19], %36 {strides = array<i32>} : memref<8x16x16xf32, #tpu.memory_space<vmem>>, vector<8x16x16xf32>,
    } else {
    }
    %c0_8 = arith.constant 0 : index
    %c0_9 = arith.constant 0 : index
    %c0_10 = arith.constant 0 : index
    %30 = vector.load %arg4[%c0_8, %c0_9, %c0_10] : memref<8x16x16xf32, #tpu.memory_space<vmem>>, vector<8x16x16xf32>
    %31 = arith.addf %30, %26 : vector<8x16x16xf32>
    %c0_11 = arith.constant 0 : index
    %c0_12 = arith.constant 0 : index
    %c0_13 = arith.constant 0 : index
    %32 = vector.load %arg4[%c0_11, %c0_12, %c0_13] : memref<8x16x16xf32, #tpu.memory_space<vmem>>, vector<8x16x16xf32>
    tpu.vector_store %arg4[%c0_11, %c0_12, %c0_13], %31 {strides = array<i32>} : memref<8x16x16xf32, #tpu.memory_space<vmem>>, vector<8x16x16xf32>,
    %c0_i32_14 = arith.constant 0 : i32
    %33 = arith.cmpi eq, %arg0, %c0_i32_14 : i32
    %34 = arith.extui %33 : i1 to i32
    %c0_i32_15 = arith.constant 0 : i32
    %35 = arith.cmpi ne, %34, %c0_i32_15 : i32
    scf.if %35 {
      %cst_16 = arith.constant 0.000000e+00 : f32
      %36 = vector.broadcast %cst_16 : f32 to vector<1x1xf32>
      %c0_17 = arith.constant 0 : index
      %c0_18 = arith.constant 0 : index
      %c0_19 = arith.constant 0 : index
      %37 = vector.load %arg4[%c0_17, %c0_18, %c0_19] : memref<8x16x16xf32, #tpu.memory_space<vmem>>, vector<8x16x16xf32>
      %38 = vector.shape_cast %37 : vector<8x16x16xf32> to vector<1x8x16x16xf32>
      %cst_20 = arith.constant dense<0.000000e+00> : vector<1xf32>
      %39 = vector.multi_reduction <add>, %38, %cst_20 [1, 2, 3] : vector<1x8x16x16xf32> to vector<1xf32>
      %40 = vector.shape_cast %39 : vector<1xf32> to vector<1x1x1x1xf32>
      %41 = vector.extract %40[0, 0, 0, 0] : f32 from vector<1x1x1x1xf32>
      %42 = vector.broadcast %41 : f32 to vector<1x1xf32>
      %43 = arith.addf %36, %42 : vector<1x1xf32>
      %c0_21 = arith.constant 0 : index
      %c0_22 = arith.constant 0 : index
      %44 = vector.load %arg3[%c0_21, %c0_22] : memref<1x1xf32, #tpu.memory_space<vmem>>, vector<1x1xf32>
      tpu.vector_store %arg3[%c0_21, %c0_22], %43 {strides = array<i32>} : memref<1x1xf32, #tpu.memory_space<vmem>>, vector<1x1xf32>,
    } else {
    }
    return
  }
  func.func @transform_0(%arg0: i32) -> (i32, i32, i32) {
    %c0_i32 = arith.constant 0 : i32
    %c0_i32_0 = arith.constant 0 : i32
    %c0_i32_1 = arith.constant 0 : i32
    return %arg0, %c0_i32, %c0_i32_0 : i32, i32, i32
  }
  func.func @transform_1(%arg0: i32) -> (i32, i32, i32) {
    %c0_i32 = arith.constant 0 : i32
    %c0_i32_0 = arith.constant 0 : i32
    %c0_i32_1 = arith.constant 0 : i32
    return %arg0, %c0_i32, %c0_i32_0 : i32, i32, i32
  }
  func.func @transform_2(%arg0: i32) -> (i32, i32) {
    %c0_i32 = arith.constant 0 : i32
    %c0_i32_0 = arith.constant 0 : i32
    %c0_i32_1 = arith.constant 0 : i32
    return %c0_i32, %c0_i32_0 : i32, i32
  }
}

</mosaic_0001>

<bundles_post_ra>
// kernel: tpu_custom_call.1
= control target key start
LH: loop header
LB: loop body
LE: loop exit
PB: predicated region body
PF: predicated region fallthrough
CT: control target
= control target key end

     0   :  { %8 = vsyncpa [#allocation4], 0  ;;  %s1346_s0 = inlined_call_operand.hbm [shape: f32[8,16,16], index: 0, kind: input, shape index: {}]   ;;  %s1347_s1 = inlined_call_operand.hbm [shape: f32[8,16,16], index: 1, kind: output, shape index: {0}]   ;;  %s1348_s2 = inlined_call_operand.hbm [shape: f32[1,1], index: 2, kind: output, shape index: {1}]  }
   0x1   :  { %9 = vsyncpa [#allocation5], 0 }
   0x2   :  { %10 = vsyncpa [#allocation8], 0  ;;  %s829_s9 = smov [#allocation3]  }
   0x3   :  { %s16_s10 = sshll.u32 %s829_s9, 4  ;;  %s17_s10 = int_to_ptr.vmem [resolvable:$true] %s16_s10 }
   0x4   :  { %s771_s11 = scalar_lea.vmem %s17_s10, 2048  ;;  %p776_p1 = scmp.lt.s32.totalorder %s17_s10, %s17_s10 }
   0x5   :  { %p772_p0 = scmp.ne.s32.totalorder %s17_s10, %s771_s11  ;;  %p777_p2 = scmp.lt.s32.totalorder %s771_s11, %s771_s11 }
   0x7   :  { %p778_p3 = por %p777_p2, %p776_p1 }
   0x9   :  { %p779_p4 = pnand %p778_p3, %p772_p0 }
   0xb   :  { %782 = shalt.err (!%p779_p4)
}
   0xc   :  { %s830_s12 = smov 128   ;;  %s831_s13 = smov 8  }
   0xd   :  { %22 = dma.hbm_to_vmem [thread:$0]  %s1346_s0, 2048, %s17_s10, [#allocation4], %s830_s12, %s830_s12, %s831_s13  }
   0xe   :  { %823 = dma.done.wait [#allocation4], 2048  }
   0xf   :  { %824 = vsyncadd [#allocation4], 4294965248  ;;  %vm494_vm0 = vcmask 130048   ;;  %v832_v0 = vmov 0.0   ;;  %v874_v1 = vld [vmem:[#allocation3] sm:$0xff]  ;;  %s833_s0 = smov 127  }
  0x10   :  { %547 = vst.msk [vmem:[#allocation2] sm:$0xff] %vm494_vm0, %v832_v0  ;;  %548 = vst.msk [vmem:[#allocation2 + $0x8] sm:$0xff] %vm494_vm0, %v832_v0  ;;  %221 = vrot.lane.b32.xlu1 %v874_v1, %s833_s0  ;;  %s834_s16 = smov 1   ;;  %v880_v2 = vld [vmem:[#allocation3 + $0x8] sm:$0xff]  ;;  %v886_v3 = vld [vmem:[#allocation3 + $0x10] sm:$0xff]  ;;  %vm58_vm1 = vcmask 1040384  }
  0x11   :  { %549 = vst.msk [vmem:[#allocation2 + $0x10] sm:$0xff] %vm494_vm0, %v832_v0  ;;  %550 = vst.msk [vmem:[#allocation2 + $0x18] sm:$0xff] %vm494_vm0, %v832_v0  ;;  %156 = vrot.lane.b32.xlu0 %v874_v1, %s834_s16  ;;  %v892_v4 = vld [vmem:[#allocation3 + $0x18] sm:$0xff]  ;;  %v898_v5 = vld [vmem:[#allocation3 + $0x20] sm:$0xff]  ;;  %vm107_vm2 = vcmask 1046528   ;;  %v109_v23 = vrot.slane %v880_v2, 1 }
  0x12   :  { %551 = vst.msk [vmem:[#allocation2 + $0x20] sm:$0xff] %vm494_vm0, %v832_v0  ;;  %552 = vst.msk [vmem:[#allocation2 + $0x28] sm:$0xff] %vm494_vm0, %v832_v0  ;;  %v904_v6 = vld [vmem:[#allocation3 + $0x28] sm:$0xff]  ;;  %v910_v7 = vld [vmem:[#allocation3 + $0x30] sm:$0xff]  ;;  %v59_v24 = vrot.slane %v874_v1, 7  ;;  %v108_v25 = vrot.slane %v874_v1, 1 }
  0x13   :  { %553 = vst.msk [vmem:[#allocation2 + $0x30] sm:$0xff] %vm494_vm0, %v832_v0  ;;  %554 = vst.msk [vmem:[#allocation2 + $0x38] sm:$0xff] %vm494_vm0, %v832_v0  ;;  %v916_v8 = vld [vmem:[#allocation3 + $0x38] sm:$0xff]  ;;  %v922_v9 = vld [vmem:[#allocation3 + $0x40] sm:$0xff]  ;;  %v60_v26 = vrot.slane %v880_v2, 7  ;;  %v62_v27 = vrot.slane %v886_v3, 7  ;;  %v148_v32 = vsel %vm107_vm2, %v109_v23, %v880_v2 }
  0x14   :  { %555 = vst.msk [vmem:[#allocation2 + $0x40] sm:$0xff] %vm494_vm0, %v832_v0  ;;  %556 = vst.msk [vmem:[#allocation2 + $0x48] sm:$0xff] %vm494_vm0, %v832_v0  ;;  %223 = vrot.lane.b32.xlu1 %v880_v2, %s833_s0  ;;  %v928_v10 = vld [vmem:[#allocation3 + $0x48] sm:$0xff]  ;;  %v934_v11 = vld [vmem:[#allocation3 + $0x50] sm:$0xff]  ;;  %v99_v28 = vsel %vm58_vm1, %v874_v1, %v59_v24  ;;  %v110_v29 = vsel %vm107_vm2, %v108_v25, %v109_v23  ;;  %v111_v30 = vrot.slane %v886_v3, 1  ;;  %v112_v31 = vrot.slane %v892_v4, 1 }
  0x15   :  { %557 = vst.msk [vmem:[#allocation2 + $0x50] sm:$0xff] %vm494_vm0, %v832_v0  ;;  %558 = vst.msk [vmem:[#allocation2 + $0x58] sm:$0xff] %vm494_vm0, %v832_v0  ;;  %158 = vrot.lane.b32.xlu0 %v880_v2, %s834_s16  ;;  %v940_v12 = vld [vmem:[#allocation3 + $0x58] sm:$0xff]  ;;  %v946_v13 = vld [vmem:[#allocation3 + $0x60] sm:$0xff]  ;;  %v61_v33 = vsel %vm58_vm1, %v59_v24, %v60_v26  ;;  %v63_v34 = vrot.slane %v892_v4, 7  ;;  %vm269_vm3 = vcmask 121856   ;;  %v286_v35 = vsub.f32 %v110_v29, %v99_v28 }
  0x16   :  { %559 = vst.msk [vmem:[#allocation2 + $0x60] sm:$0xff] %vm494_vm0, %v832_v0  ;;  %560 = vst.msk [vmem:[#allocation2 + $0x68] sm:$0xff] %vm494_vm0, %v832_v0  ;;  %v952_v14 = vld [vmem:[#allocation3 + $0x68] sm:$0xff]  ;;  %v958_v15 = vld [vmem:[#allocation3 + $0x70] sm:$0xff]  ;;  %vm204_vm4 = vcmask 7168   ;;  %v100_v36 = vsel %vm58_vm1, %v886_v3, %v62_v27  ;;  %v287_v37 = vsub.f32 %v148_v32, %v61_v33  ;;  %v113_v38 = vsel %vm107_vm2, %v111_v30, %v112_v31  ;;  %s835_s17 = smov [#allocation6]  }
  0x17   :  { %561 = vst.msk [vmem:[#allocation2 + $0x70] sm:$0xff] %vm494_vm0, %v832_v0  ;;  %562 = vst.msk [vmem:[#allocation2 + $0x78] sm:$0xff] %vm494_vm0, %v832_v0  ;;  %v960_v16 = vld [vmem:[#allocation3 + $0x78] sm:$0xff]  ;;  %v80_v17 = vrot.slane %v958_v15, 7  ;;  %v149_v39 = vsel %vm107_vm2, %v112_v31, %v892_v4  ;;  %v65_v40 = vrot.slane %v898_v5, 7  ;;  %v64_v43 = vsel %vm58_vm1, %v62_v27, %v63_v34  ;;  %s679_s18 = sshll.u32 %s835_s17, 4  ;;  %s680_s18 = int_to_ptr.vmem [resolvable:$true] %s679_s18 }
  0x18   :  { %225 = vrot.lane.b32.xlu1 %v886_v3, %s833_s0  ;;  %v130_v18 = vrot.slane %v960_v16, 1  ;;  %v81_v19 = vrot.slane %v960_v16, 7  ;;  %v114_v44 = vrot.slane %v898_v5, 1  ;;  %v115_v45 = vrot.slane %v904_v6, 1  ;;  %s783_s19 = scalar_lea.vmem %s680_s18, 2048  ;;  %p788_p6 = scmp.lt.s32.totalorder %s680_s18, %s680_s18 }
  0x19   :  { %160 = vrot.lane.b32.xlu0 %v886_v3, %s834_s16  ;;  %v66_v46 = vrot.slane %v904_v6, 7  ;;  %v334_v50 = vmul.f32 %v286_v35, %v286_v35  ;;  %v335_v51 = vmul.f32 %v287_v37, %v287_v37  ;;  %v288_v52 = vsub.f32 %v113_v38, %v100_v36  ;;  %p784_p5 = scmp.ne.s32.totalorder %s680_s18, %s783_s19  ;;  %p789_p7 = scmp.lt.s32.totalorder %s783_s19, %s783_s19 }
  0x1a   :  { %v82_v20 = vsel %vm58_vm1, %v80_v17, %v81_v19  ;;  %v155_v21 = vsel %vm107_vm2, %v130_v18, %v960_v16  ;;  %v289_v53 = vsub.f32 %v149_v39, %v64_v43  ;;  %v101_v54 = vsel %vm58_vm1, %v898_v5, %v65_v40 }
  0x1b   :  { %v976_v22 = vsub.f32 %v155_v21, %v82_v20  ;;  %v116_v58 = vsel %vm107_vm2, %v114_v44, %v115_v45  ;;  %v67_v59 = vsel %vm58_vm1, %v65_v40, %v66_v46  ;;  %v150_v60 = vsel %vm107_vm2, %v115_v45, %v904_v6  ;;  %p790_p8 = por %p789_p7, %p788_p6 }
  0x1c   :  { %227 = vrot.lane.b32.xlu1 %v892_v4, %s833_s0  ;;  %v68_v63 = vrot.slane %v910_v7, 7  ;;  %v117_v0 = vrot.slane %v910_v7, 1  ;;  %v118_v20 = vrot.slane %v916_v8, 1  ;;  %v69_v21 = vrot.slane %v916_v8, 7 }
  0x1d   :  { %162 = vrot.lane.b32.xlu0 %v892_v4, %s834_s16  ;;  %v336_v23 = vmul.f32 %v288_v52, %v288_v52  ;;  %v71_v24 = vrot.slane %v922_v9, 7  ;;  %v120_v25 = vrot.slane %v922_v9, 1  ;;  %v121_v26 = vrot.slane %v928_v10, 1  ;;  %p791_p9 = pnand %p790_p8, %p784_p5 }
  0x1e   :  { %v337_v30 = vmul.f32 %v289_v53, %v289_v53  ;;  %v290_v31 = vsub.f32 %v116_v58, %v101_v54  ;;  %v291_v34 = vsub.f32 %v150_v60, %v67_v59  ;;  %v102_v35 = vsel %vm58_vm1, %v910_v7, %v68_v63 }
  0x1f   :  { %v119_v36 = vsel %vm107_vm2, %v117_v0, %v118_v20  ;;  %v70_v37 = vsel %vm58_vm1, %v68_v63, %v69_v21  ;;  %v151_v38 = vsel %vm107_vm2, %v118_v20, %v916_v8  ;;  %v72_v44 = vrot.slane %v928_v10, 7 }
  0x20   :  { %229 = vrot.lane.b32.xlu1 %v898_v5, %s833_s0  ;;  %v74_v45 = vrot.slane %v934_v11, 7  ;;  %v123_v46 = vrot.slane %v934_v11, 1  ;;  %v338_v54 = vmul.f32 %v290_v31, %v290_v31  ;;  %v293_v58 = vsub.f32 %v151_v38, %v70_v37 }
  0x21   :  { %164 = vrot.lane.b32.xlu0 %v898_v5, %s834_s16  ;;  %v73_v63 = vsel %vm58_vm1, %v71_v24, %v72_v44  ;;  %v78_v44 = vrot.slane %v952_v14, 7 }
  0x24   :  { %231 = vrot.lane.b32.xlu1 %v904_v6, %s833_s0 }
  0x25   :  { %166 = vrot.lane.b32.xlu0 %v904_v6, %s834_s16 }
  0x28   :  { %233 = vrot.lane.b32.xlu1 %v910_v7, %s833_s0 }
  0x29   :  { %168 = vrot.lane.b32.xlu0 %v910_v7, %s834_s16 }
  0x2c   :  { %235 = vrot.lane.b32.xlu1 %v916_v8, %s833_s0 }
  0x2d   :  { %170 = vrot.lane.b32.xlu0 %v916_v8, %s834_s16 }
  0x30   :  { %237 = vrot.lane.b32.xlu1 %v922_v9, %s833_s0 }
  0x31   :  { %172 = vrot.lane.b32.xlu0 %v922_v9, %s834_s16 }
  0x34   :  { %239 = vrot.lane.b32.xlu1 %v928_v10, %s833_s0 }
  0x35   :  { %174 = vrot.lane.b32.xlu0 %v928_v10, %s834_s16 }
  0x38   :  { %241 = vrot.lane.b32.xlu1 %v934_v11, %s833_s0 }
  0x39   :  { %176 = vrot.lane.b32.xlu0 %v934_v11, %s834_s16 }
  0x3c   :  { %243 = vrot.lane.b32.xlu1 %v940_v12, %s833_s0 }
  0x3d   :  { %178 = vrot.lane.b32.xlu0 %v940_v12, %s834_s16 }
  0x40   :  { %245 = vrot.lane.b32.xlu1 %v946_v13, %s833_s0 }
  0x41   :  { %180 = vrot.lane.b32.xlu0 %v946_v13, %s834_s16 }
  0x44   :  { %247 = vrot.lane.b32.xlu1 %v952_v14, %s833_s0 }
  0x45   :  { %182 = vrot.lane.b32.xlu0 %v952_v14, %s834_s16 }
  0x48   :  { %249 = vrot.lane.b32.xlu1 %v958_v15, %s833_s0 }
  0x49   :  { %184 = vrot.lane.b32.xlu0 %v958_v15, %s834_s16 }
  0x4c   :  { %251 = vrot.lane.b32.xlu1 %v960_v16, %s833_s0 }
  0x4d   :  { %186 = vrot.lane.b32.xlu0 %v960_v16, %s834_s16 }
  0x82   :  { %v222_v41 = vpop.permute.xlu1 %221 }
  0x83   :  { %v157_v42 = vpop.permute.xlu0 %156  ;;  %v270_v47 = vsel %vm269_vm3, %v222_v41, %v874_v1  ;;  %v103_v41 = vsel %vm58_vm1, %v922_v9, %v71_v24 }
  0x84   :  { %v205_v48 = vsel %vm204_vm4, %v874_v1, %v157_v42 }
  0x85   :  { %v302_v49 = vsub.f32 %v270_v47, %v205_v48  ;;  %v124_v47 = vrot.slane %v940_v12, 1 }
  0x86   :  { %v224_v56 = vpop.permute.xlu1 %223 }
  0x87   :  { %v318_v55 = vmul.f32 2.0, %v302_v49  ;;  %v159_v57 = vpop.permute.xlu0 %158  ;;  %v271_v61 = vsel %vm269_vm3, %v224_v56, %v880_v2  ;;  %v75_v56 = vrot.slane %v940_v12, 7  ;;  %v125_v20 = vsel %vm107_vm2, %v123_v46, %v124_v47 }
  0x88   :  { %v206_v62 = vsel %vm204_vm4, %v880_v2, %v159_v57  ;;  %v292_v57 = vsub.f32 %v119_v36, %v102_v35 }
  0x89   :  { %v350_v1 = vmul.f32 %v318_v55, %v318_v55  ;;  %v303_v19 = vsub.f32 %v271_v61, %v206_v62  ;;  %v1053_v55 = vmul.f32 %v291_v34, %v291_v34  ;;  %v76_v24 = vsel %vm58_vm1, %v74_v45, %v75_v56 }
  0x8a   :  { %v226_v28 = vpop.permute.xlu1 %225 }
  0x8b   :  { %v1027_v27 = vadd.f32 %v350_v1, %v334_v50  ;;  %v319_v2 = vmul.f32 2.0, %v303_v19  ;;  %v161_v29 = vpop.permute.xlu0 %160  ;;  %v272_v32 = vsel %vm269_vm3, %v226_v28, %v886_v3  ;;  %v104_v19 = vsel %vm58_vm1, %v934_v11, %v74_v45 }
  0x8c   :  { %v207_v33 = vsel %vm204_vm4, %v886_v3, %v161_v29  ;;  %v122_v3 = vsel %vm107_vm2, %v120_v25, %v121_v26  ;;  %v77_v28 = vrot.slane %v946_v13, 7  ;;  %v126_v29 = vrot.slane %v946_v13, 1 }
  0x8d   :  { %731 = vrsqrt.f32 %v1027_v27  ;;  %v351_v39 = vmul.f32 %v319_v2, %v319_v2  ;;  %v304_v40 = vsub.f32 %v272_v32, %v207_v33  ;;  %v294_v59 = vsub.f32 %v122_v3, %v103_v41 }
  0x8e   :  { %v228_v42 = vpop.permute.xlu1 %227  ;;  %v1076_v33 = vmul.f32 %v292_v57, %v292_v57  ;;  %v296_v41 = vsub.f32 %v125_v20, %v104_v19  ;;  %vm384_vm5 = vcmp.eq.f32.partialorder %v1027_v27, inf  ;;  %vm386_vm6 = vcmp.eq.f32.partialorder %v1027_v27, 0.0 }
  0x8f   :  { %v163_v43 = vpop.permute.xlu0 %162  ;;  %v1047_v48 = vadd.f32 %v351_v39, %v335_v51  ;;  %v320_v49 = vmul.f32 2.0, %v304_v40  ;;  %v273_v50 = vsel %vm269_vm3, %v228_v42, %v892_v4  ;;  %v1080_v34 = vmul.f32 %v294_v59, %v294_v59 }
  0x90   :  { %v208_v52 = vsel %vm204_vm4, %v892_v4, %v163_v43  ;;  %v152_v4 = vsel %vm107_vm2, %v121_v26, %v928_v10  ;;  %v153_v26 = vsel %vm107_vm2, %v124_v47, %v940_v12  ;;  %v105_v43 = vsel %vm58_vm1, %v946_v13, %v77_v28 }
  0x91   :  { %v305_v53 = vsub.f32 %v273_v50, %v208_v52  ;;  %733 = vrsqrt.f32 %v1047_v48  ;;  %v352_v51 = vmul.f32 %v320_v49, %v320_v49  ;;  %v295_v40 = vsub.f32 %v152_v4, %v73_v63 }
  0x92   :  { %v230_v61 = vpop.permute.xlu1 %229  ;;  %v297_v3 = vsub.f32 %v153_v26, %v76_v24  ;;  %v387_v50 = vand.u32 2147483648, %v1027_v27  ;;  %vm391_vm7 = vcmp.eq.f32.partialorder %v1047_v48, inf  ;;  %v394_v24 = vand.u32 2147483648, %v1047_v48 }
  0x93   :  { %v321_v60 = vmul.f32 2.0, %v305_v53  ;;  %v165_v62 = vpop.permute.xlu0 %164  ;;  %v274_v0 = vsel %vm269_vm3, %v230_v61, %v898_v5  ;;  %v1067_v21 = vadd.f32 %v352_v51, %v336_v23  ;;  %v1078_v23 = vmul.f32 %v293_v58, %v293_v58 }
  0x94   :  { %v209_v1 = vsel %vm204_vm4, %v898_v5, %v165_v62  ;;  %v127_v5 = vrot.slane %v952_v14, 1  ;;  %v1106_v61 = vmul.f32 %v296_v41, %v296_v41  ;;  %v1108_v62 = vmul.f32 %v297_v3, %v297_v3 }
  0x95   :  { %v353_v25 = vmul.f32 %v321_v60, %v321_v60  ;;  %v306_v2 = vsub.f32 %v274_v0, %v209_v1  ;;  %735 = vrsqrt.f32 %v1067_v21  ;;  %v1104_v60 = vmul.f32 %v295_v40, %v295_v40  ;;  %v563_v1 = vld [vmem:[#allocation2] sm:$0xff] }
  0x96   :  { %v232_v31 = vpop.permute.xlu1 %231  ;;  %vm393_vm8 = vcmp.eq.f32.partialorder %v1047_v48, 0.0  ;;  %vm398_vm9 = vcmp.eq.f32.partialorder %v1067_v21, inf  ;;  %vm400_vm10 = vcmp.eq.f32.partialorder %v1067_v21, 0.0 }
  0x97   :  { %v167_v32 = vpop.permute.xlu0 %166  ;;  %v1082_v35 = vadd.f32 %v353_v25, %v337_v30  ;;  %v322_v36 = vmul.f32 2.0, %v306_v2  ;;  %v275_v37 = vsel %vm269_vm3, %v232_v31, %v904_v6  ;;  %v128_v30 = vsel %vm107_vm2, %v126_v29, %v127_v5 }
  0x98   :  { %v210_v38 = vsel %vm204_vm4, %v904_v6, %v167_v32 }
  0x99   :  { %v307_v39 = vsub.f32 %v275_v37, %v210_v38  ;;  %737 = vrsqrt.f32 %v1082_v35  ;;  %v354_v46 = vmul.f32 %v322_v36, %v322_v36  ;;  %vm405_vm11 = vcmp.eq.f32.partialorder %v1082_v35, inf }
  0x9a   :  { %v732_v42 = vpop.eup %731  ;;  %v234_v47 = vpop.permute.xlu1 %233  ;;  %vm407_vm12 = vcmp.eq.f32.partialorder %v1082_v35, 0.0 }
  0x9b   :  { %v383_v45 = vmul.f32 %v732_v42, %v1027_v27  ;;  %v323_v6 = vmul.f32 2.0, %v307_v39  ;;  %v169_v49 = vpop.permute.xlu0 %168  ;;  %v276_v52 = vsel %vm269_vm3, %v234_v47, %v910_v7  ;;  %v1102_v57 = vadd.f32 %v354_v46, %v338_v54 }
  0x9c   :  { %v211_v53 = vsel %vm204_vm4, %v910_v7, %v169_v49  ;;  %v79_v54 = vsel %vm58_vm1, %v77_v28, %v78_v44  ;;  %v401_v46 = vand.u32 2147483648, %v1067_v21 }
  0x9d   :  { %v385_v56 = vsel %vm384_vm5, %v1027_v27, %v383_v45  ;;  %v355_v58 = vmul.f32 %v323_v6, %v323_v6  ;;  %v308_v59 = vsub.f32 %v276_v52, %v211_v53  ;;  %739 = vrsqrt.f32 %v1102_v57 }
  0x9e   :  { %v388_v51 = vsel %vm386_vm6, %v387_v50, %v385_v56  ;;  %v734_v63 = vpop.eup %733  ;;  %v236_v7 = vpop.permute.xlu1 %235  ;;  %v298_v27 = vsub.f32 %v128_v30, %v105_v43  ;;  %v408_v56 = vand.u32 2147483648, %v1082_v35  ;;  %vm412_vm13 = vcmp.eq.f32.partialorder %v1102_v57, inf }
  0x9f   :  { %495 = vst.msk [vmem:[#allocation6] sm:$0xff] %vm494_vm0, %v388_v51  ;;  %v705_v4 = vadd.f32 -1.0, %v388_v51  ;;  %v171_v0 = vpop.permute.xlu0 %170  ;;  %v390_v19 = vmul.f32 %v734_v63, %v1047_v48  ;;  %v1116_v20 = vadd.f32 %v355_v58, %v1053_v55  ;;  %v324_v25 = vmul.f32 2.0, %v308_v59  ;;  %v565_v63 = vld [vmem:[#allocation2 + $0x10] sm:$0xff] }
  0xa0   :  { %v277_v26 = vsel %vm269_vm3, %v236_v7, %v916_v8  ;;  %v212_v29 = vsel %vm204_vm4, %v916_v8, %v171_v0  ;;  %v154_v55 = vsel %vm107_vm2, %v127_v5, %v952_v14  ;;  %v1128_v39 = vmul.f32 %v298_v27, %v298_v27  ;;  %v564_v5 = vld [vmem:[#allocation2 + $0x8] sm:$0xff] }
  0xa1   :  { %v527_v2 = vmul.f32 %v705_v4, %v705_v4  ;;  %v392_v28 = vsel %vm391_vm7, %v1047_v48, %v390_v19  ;;  %741 = vrsqrt.f32 %v1116_v20  ;;  %v356_v36 = vmul.f32 %v324_v25, %v324_v25 }
  0xa2   :  { %v395_v32 = vsel %vm393_vm8, %v394_v24, %v392_v28  ;;  %v238_v37 = vpop.permute.xlu1 %237  ;;  %v736_v40 = vpop.eup %735  ;;  %v309_v41 = vsub.f32 %v277_v26, %v212_v29  ;;  %v1140_v44 = vsub.f32 %v154_v55, %v79_v54  ;;  %v129_v0 = vrot.slane %v958_v15, 1  ;;  %v566_v55 = vld [vmem:[#allocation2 + $0x18] sm:$0xff] }
  0xa3   :  { %v579_v31 = vadd.f32 %v563_v1, %v527_v2  ;;  %v173_v38 = vpop.permute.xlu0 %172  ;;  %496 = vst.msk [vmem:[#allocation6 + $0x8] sm:$0xff] %vm494_vm0, %v395_v32  ;;  %v706_v8 = vadd.f32 -1.0, %v395_v32  ;;  %v278_v48 = vsel %vm269_vm3, %v238_v37, %v922_v9  ;;  %v397_v42 = vmul.f32 %v736_v40, %v1067_v21 }
  0xa4   :  { %v213_v3 = vsel %vm204_vm4, %v922_v9, %v173_v38  ;;  %v1138_v43 = vadd.f32 %v356_v36, %v1076_v33  ;;  %v325_v6 = vmul.f32 2.0, %v309_v41  ;;  %v415_v36 = vand.u32 2147483648, %v1102_v57 }
  0xa5   :  { %595 = vst.msk [vmem:[#allocation2] sm:$0xff] %vm494_vm0, %v579_v31  ;;  %v310_v30 = vsub.f32 %v278_v48, %v213_v3  ;;  %v528_v45 = vmul.f32 %v706_v8, %v706_v8  ;;  %v399_v9 = vsel %vm398_vm9, %v1067_v21, %v397_v42  ;;  %vm414_vm14 = vcmp.eq.f32.partialorder %v1102_v57, 0.0 }
  0xa6   :  { %v738_v47 = vpop.eup %737  ;;  %743 = vrsqrt.f32 %v1138_v43  ;;  %v240_v33 = vpop.permute.xlu1 %239  ;;  %v402_v52 = vsel %vm400_vm10, %v401_v46, %v399_v9  ;;  %v357_v59 = vmul.f32 %v325_v6, %v325_v6  ;;  %vm419_vm15 = vcmp.eq.f32.partialorder %v1116_v20, inf }
  0xa7   :  { %v175_v49 = vpop.permute.xlu0 %174  ;;  %v580_v50 = vadd.f32 %v564_v5, %v528_v45  ;;  %v404_v53 = vmul.f32 %v738_v47, %v1082_v35  ;;  %497 = vst.msk [vmem:[#allocation6 + $0x10] sm:$0xff] %vm494_vm0, %v402_v52  ;;  %v707_v58 = vadd.f32 -1.0, %v402_v52  ;;  %v326_v51 = vmul.f32 2.0, %v310_v30 }
  0xa8   :  { %v279_v21 = vsel %vm269_vm3, %v240_v33, %v928_v10  ;;  %v214_v7 = vsel %vm204_vm4, %v928_v10, %v175_v49  ;;  %v1160_v1 = vadd.f32 %v357_v59, %v1078_v23  ;;  %v1173_v23 = vsel %vm58_vm1, %v958_v15, %v80_v17 }
  0xa9   :  { %596 = vst.msk [vmem:[#allocation2 + $0x8] sm:$0xff] %vm494_vm0, %v580_v50  ;;  %v406_v4 = vsel %vm405_vm11, %v1082_v35, %v404_v53  ;;  %v529_v27 = vmul.f32 %v707_v58, %v707_v58  ;;  %v358_v19 = vmul.f32 %v326_v51, %v326_v51  ;;  %v311_v29 = vsub.f32 %v279_v21, %v214_v7  ;;  %v568_v21 = vld [vmem:[#allocation2 + $0x28] sm:$0xff] }
  0xaa   :  { %v409_v54 = vsel %vm407_vm12, %v408_v56, %v406_v4  ;;  %v242_v25 = vpop.permute.xlu1 %241  ;;  %v740_v24 = vpop.eup %739  ;;  %745 = vrsqrt.f32 %v1160_v1  ;;  %vm421_vm1 = vcmp.eq.f32.partialorder %v1116_v20, 0.0  ;;  %v422_v42 = vand.u32 2147483648, %v1116_v20 }
  0xab   :  { %v177_v2 = vpop.permute.xlu0 %176  ;;  %498 = vst.msk [vmem:[#allocation6 + $0x18] sm:$0xff] %vm494_vm0, %v409_v54  ;;  %v708_v26 = vadd.f32 -1.0, %v409_v54  ;;  %v280_v35 = vsel %vm269_vm3, %v242_v25, %v934_v11  ;;  %v581_v28 = vadd.f32 %v565_v63, %v529_v27  ;;  %v411_v31 = vmul.f32 %v740_v24, %v1102_v57 }
  0xac   :  { %v215_v10 = vsel %vm204_vm4, %v934_v11, %v177_v2  ;;  %v1178_v37 = vadd.f32 %v358_v19, %v1080_v34  ;;  %v327_v40 = vmul.f32 2.0, %v311_v29  ;;  %v131_v52 = vsel %vm107_vm2, %v129_v0, %v130_v18  ;;  %v569_v29 = vld [vmem:[#allocation2 + $0x30] sm:$0xff] }
  0xad   :  { %v530_v32 = vmul.f32 %v708_v26, %v708_v26  ;;  %597 = vst.msk [vmem:[#allocation2 + $0x10] sm:$0xff] %vm494_vm0, %v581_v28  ;;  %v413_v38 = vsel %vm412_vm13, %v1102_v57, %v411_v31  ;;  %v312_v8 = vsub.f32 %v280_v35, %v215_v10  ;;  %v567_v57 = vld [vmem:[#allocation2 + $0x20] sm:$0xff]  ;;  %vm426_vm2 = vcmp.eq.f32.partialorder %v1138_v43, inf }
  0xae   :  { %v742_v11 = vpop.eup %741  ;;  %v244_v41 = vpop.permute.xlu1 %243  ;;  %v416_v3 = vsel %vm414_vm14, %v415_v36, %v413_v38  ;;  %747 = vrsqrt.f32 %v1178_v37  ;;  %v359_v45 = vmul.f32 %v327_v40, %v327_v40  ;;  %v429_v7 = vand.u32 2147483648, %v1138_v43 }
  0xaf   :  { %v179_v17 = vpop.permute.xlu0 %178  ;;  %v582_v48 = vadd.f32 %v566_v55, %v530_v32  ;;  %v418_v5 = vmul.f32 %v742_v11, %v1116_v20  ;;  %499 = vst.msk [vmem:[#allocation6 + $0x20] sm:$0xff] %vm494_vm0, %v416_v3  ;;  %v709_v34 = vadd.f32 -1.0, %v416_v3  ;;  %v328_v46 = vmul.f32 2.0, %v312_v8 }
  0xb0   :  { %v281_v6 = vsel %vm269_vm3, %v244_v41, %v940_v12  ;;  %v216_v33 = vsel %vm204_vm4, %v940_v12, %v179_v17  ;;  %v1200_v56 = vadd.f32 %v359_v45, %v1104_v60  ;;  %vm428_vm5 = vcmp.eq.f32.partialorder %v1138_v43, 0.0  ;;  %v570_v45 = vld [vmem:[#allocation2 + $0x38] sm:$0xff] }
  0xb1   :  { %598 = vst.msk [vmem:[#allocation2 + $0x18] sm:$0xff] %vm494_vm0, %v582_v48  ;;  %v420_v30 = vsel %vm419_vm15, %v1116_v20, %v418_v5  ;;  %v531_v47 = vmul.f32 %v709_v34, %v709_v34  ;;  %v360_v58 = vmul.f32 %v328_v46, %v328_v46  ;;  %v313_v59 = vsub.f32 %v281_v6, %v216_v33 }
  0xb2   :  { %v423_v9 = vsel %vm421_vm1, %v422_v42, %v420_v30  ;;  %v246_v49 = vpop.permute.xlu1 %245  ;;  %749 = vrsqrt.f32 %v1200_v56  ;;  %vm433_vm6 = vcmp.eq.f32.partialorder %v1160_v1, inf  ;;  %vm435_vm7 = vcmp.eq.f32.partialorder %v1160_v1, 0.0 }
  0xb3   :  { %v181_v50 = vpop.permute.xlu0 %180  ;;  %v744_v53 = vpop.eup %743  ;;  %500 = vst.msk [vmem:[#allocation6 + $0x28] sm:$0xff] %vm494_vm0, %v423_v9  ;;  %v710_v20 = vadd.f32 -1.0, %v423_v9  ;;  %v583_v51 = vadd.f32 %v567_v57, %v531_v47  ;;  %v282_v12 = vsel %vm269_vm3, %v246_v49, %v946_v13  ;;  %v1214_v0 = vadd.f32 %v360_v58, %v1106_v61  ;;  %v571_v58 = vld [vmem:[#allocation2 + $0x40] sm:$0xff] }
  0xb4   :  { %v425_v63 = vmul.f32 %v744_v53, %v1138_v43  ;;  %v217_v4 = vsel %vm204_vm4, %v946_v13, %v181_v50  ;;  %v329_v27 = vmul.f32 2.0, %v313_v59  ;;  %v436_v32 = vand.u32 2147483648, %v1160_v1 }
  0xb5   :  { %v532_v18 = vmul.f32 %v710_v20, %v710_v20  ;;  %599 = vst.msk [vmem:[#allocation2 + $0x20] sm:$0xff] %vm494_vm0, %v583_v51  ;;  %v314_v2 = vsub.f32 %v282_v12, %v217_v4  ;;  %751 = vrsqrt.f32 %v1214_v0  ;;  %v347_v42 = vmul.f32 %v1140_v44, %v1140_v44 }
  0xb6   :  { %v427_v60 = vsel %vm426_vm2, %v1138_v43, %v425_v63  ;;  %v248_v54 = vpop.permute.xlu1 %247  ;;  %v300_v43 = vsub.f32 %v131_v52, %v1173_v23  ;;  %v361_v35 = vmul.f32 %v329_v27, %v329_v27  ;;  %vm440_vm8 = vcmp.eq.f32.partialorder %v1178_v37, inf }
  0xb7   :  { %v183_v19 = vpop.permute.xlu0 %182  ;;  %v584_v13 = vadd.f32 %v568_v21, %v532_v18  ;;  %v430_v25 = vsel %vm428_vm5, %v429_v7, %v427_v60  ;;  %v283_v24 = vsel %vm269_vm3, %v248_v54, %v952_v14  ;;  %v746_v61 = vpop.eup %745  ;;  %v330_v10 = vmul.f32 2.0, %v314_v2  ;;  %v572_v2 = vld [vmem:[#allocation2 + $0x48] sm:$0xff] }
  0xb8   :  { %501 = vst.msk [vmem:[#allocation6 + $0x30] sm:$0xff] %vm494_vm0, %v430_v25  ;;  %v711_v26 = vadd.f32 -1.0, %v430_v25  ;;  %v218_v28 = vsel %vm204_vm4, %v952_v14, %v183_v19  ;;  %v432_v31 = vmul.f32 %v746_v61, %v1160_v1  ;;  %v1229_v23 = vadd.f32 %v361_v35, %v1108_v62  ;;  %v573_v35 = vld [vmem:[#allocation2 + $0x50] sm:$0xff] }
  0xb9   :  { %600 = vst.msk [vmem:[#allocation2 + $0x28] sm:$0xff] %vm494_vm0, %v584_v13  ;;  %v315_v36 = vsub.f32 %v283_v24, %v218_v28  ;;  %v362_v40 = vmul.f32 %v330_v10, %v330_v10  ;;  %v443_v57 = vand.u32 2147483648, %v1178_v37  ;;  %vm442_vm9 = vcmp.eq.f32.partialorder %v1178_v37, 0.0 }
  0xba   :  { %v533_v55 = vmul.f32 %v711_v26, %v711_v26  ;;  %v250_v11 = vpop.permute.xlu1 %249  ;;  %v434_v48 = vsel %vm433_vm6, %v1160_v1, %v432_v31  ;;  %753 = vrsqrt.f32 %v1229_v23  ;;  %v348_v49 = vmul.f32 %v300_v43, %v300_v43 }
  0xbb   :  { %v185_v38 = vpop.permute.xlu0 %184  ;;  %v284_v8 = vsel %vm269_vm3, %v250_v11, %v958_v15  ;;  %v748_v17 = vpop.eup %747  ;;  %v331_v3 = vmul.f32 2.0, %v315_v36  ;;  %v437_v34 = vsel %vm435_vm7, %v436_v32, %v434_v48  ;;  %v1249_v30 = vadd.f32 %v362_v40, %v1128_v39  ;;  %v615_v32 = vld [vmem:[#allocation2 + $0x8] sm:$0xff]  ;;  %v614_v11 = vld [vmem:[#allocation2] sm:$0xff] }
  0xbc   :  { %v219_v41 = vsel %vm204_vm4, %v958_v15, %v185_v38  ;;  %v585_v14 = vadd.f32 %v569_v29, %v533_v55  ;;  %v439_v62 = vmul.f32 %v748_v17, %v1178_v37  ;;  %502 = vst.msk [vmem:[#allocation6 + $0x38] sm:$0xff] %vm494_vm0, %v437_v34  ;;  %v712_v15 = vadd.f32 -1.0, %v437_v34  ;;  %v617_v34 = vld [vmem:[#allocation2 + $0x18] sm:$0xff] }
  0xbd   :  { %v316_v5 = vsub.f32 %v284_v8, %v219_v41  ;;  %v363_v6 = vmul.f32 %v331_v3, %v331_v3  ;;  %755 = vrsqrt.f32 %v1249_v30  ;;  %vm447_vm10 = vcmp.eq.f32.partialorder %v1200_v56, inf  ;;  %v616_v41 = vld [vmem:[#allocation2 + $0x10] sm:$0xff] }
  0xbe   :  { %601 = vst.msk [vmem:[#allocation2 + $0x30] sm:$0xff] %vm494_vm0, %v585_v14  ;;  %v252_v1 = vpop.permute.xlu1 %251  ;;  %v441_v46 = vsel %vm440_vm8, %v1178_v37, %v439_v62  ;;  %v534_v9 = vmul.f32 %v712_v15, %v712_v15  ;;  %v450_v63 = vand.u32 2147483648, %v1200_v56  ;;  %v349_v54 = vmul.f32 %v976_v22, %v976_v22 }
  0xbf   :  { %v332_v44 = vmul.f32 2.0, %v316_v5  ;;  %v187_v47 = vpop.permute.xlu0 %186  ;;  %v444_v33 = vsel %vm442_vm9, %v443_v57, %v441_v46  ;;  %v1255_v52 = vadd.f32 %v363_v6, %v347_v42  ;;  %v285_v39 = vsel %vm269_vm3, %v252_v1, %v960_v16  ;;  %v750_v53 = vpop.eup %749  ;;  %v618_v6 = vld [vmem:[#allocation2 + $0x20] sm:$0xff] }
  0xc0   :  { %503 = vst.msk [vmem:[#allocation6 + $0x40] sm:$0xff] %vm494_vm0, %v444_v33  ;;  %v713_v50 = vadd.f32 -1.0, %v444_v33  ;;  %v586_v20 = vadd.f32 %v570_v45, %v534_v9  ;;  %v220_v59 = vsel %vm204_vm4, %v960_v16, %v187_v47  ;;  %v446_v21 = vmul.f32 %v750_v53, %v1200_v56  ;;  %v575_v9 = vld [vmem:[#allocation2 + $0x60] sm:$0xff] }
  0xc1   :  { %v364_v37 = vmul.f32 %v332_v44, %v332_v44  ;;  %757 = vrsqrt.f32 %v1255_v52  ;;  %v317_v4 = vsub.f32 %v285_v39, %v220_v59  ;;  %vm449_vm3 = vcmp.eq.f32.partialorder %v1200_v56, 0.0 }
  0xc2   :  { %v535_v51 = vmul.f32 %v713_v50, %v713_v50  ;;  %602 = vst.msk [vmem:[#allocation2 + $0x38] sm:$0xff] %vm494_vm0, %v586_v20  ;;  %v752_v18 = vpop.eup %751  ;;  %v448_v60 = vsel %vm447_vm10, %v1200_v56, %v446_v21  ;;  %vm454_vm4 = vcmp.eq.f32.partialorder %v1214_v0, inf  ;;  %v457_v13 = vand.u32 2147483648, %v1214_v0  ;;  %v619_v20 = vld [vmem:[#allocation2 + $0x28] sm:$0xff] }
  0xc3   :  { %v1266_v12 = vadd.f32 %v364_v37, %v348_v49  ;;  %v451_v16 = vsel %vm449_vm3, %v450_v63, %v448_v60  ;;  %v453_v27 = vmul.f32 %v752_v18, %v1214_v0  ;;  %v333_v25 = vmul.f32 2.0, %v317_v4  ;;  %v576_v21 = vld [vmem:[#allocation2 + $0x68] sm:$0xff] }
  0xc4   :  { %v587_v7 = vadd.f32 %v571_v58, %v535_v51  ;;  %504 = vst.msk [vmem:[#allocation6 + $0x48] sm:$0xff] %vm494_vm0, %v451_v16  ;;  %v714_v19 = vadd.f32 -1.0, %v451_v16  ;;  %vm456_vm11 = vcmp.eq.f32.partialorder %v1214_v0, 0.0  ;;  %vm461_vm12 = vcmp.eq.f32.partialorder %v1229_v23, inf }
  0xc5   :  { %759 = vrsqrt.f32 %v1266_v12  ;;  %v455_v56 = vsel %vm454_vm4, %v1214_v0, %v453_v27  ;;  %v365_v43 = vmul.f32 %v333_v25, %v333_v25  ;;  %v464_v31 = vand.u32 2147483648, %v1229_v23  ;;  %v620_v4 = vld [vmem:[#allocation2 + $0x30] sm:$0xff] }
  0xc6   :  { %603 = vst.msk [vmem:[#allocation2 + $0x40] sm:$0xff] %vm494_vm0, %v587_v7  ;;  %v536_v24 = vmul.f32 %v714_v19, %v714_v19  ;;  %v458_v26 = vsel %vm456_vm11, %v457_v13, %v455_v56  ;;  %vm463_vm13 = vcmp.eq.f32.partialorder %v1229_v23, 0.0  ;;  %vm468_vm14 = vcmp.eq.f32.partialorder %v1249_v30, inf  ;;  %v577_v25 = vld [vmem:[#allocation2 + $0x70] sm:$0xff] }
  0xc7   :  { %v754_v61 = vpop.eup %753  ;;  %505 = vst.msk [vmem:[#allocation6 + $0x50] sm:$0xff] %vm494_vm0, %v458_v26  ;;  %v715_v22 = vadd.f32 -1.0, %v458_v26  ;;  %v1282_v28 = vadd.f32 %v365_v43, %v349_v54  ;;  %v471_v14 = vand.u32 2147483648, %v1249_v30  ;;  %v631_v48 = vsel %vm494_vm0, %v615_v32, 0.0 }
  0xc8   :  { %v588_v29 = vadd.f32 %v572_v2, %v536_v24  ;;  %v460_v10 = vmul.f32 %v754_v61, %v1229_v23  ;;  %vm470_vm15 = vcmp.eq.f32.partialorder %v1249_v30, 0.0  ;;  %v630_v62 = vsel %vm494_vm0, %v614_v11, 0.0 }
  0xc9   :  { %v537_v55 = vmul.f32 %v715_v22, %v715_v22  ;;  %761 = vrsqrt.f32 %v1282_v28  ;;  %v633_v1 = vsel %vm494_vm0, %v616_v41, 0.0  ;;  %vm475_vm1 = vcmp.eq.f32.partialorder %v1255_v52, inf  ;;  %v621_v54 = vld [vmem:[#allocation2 + $0x38] sm:$0xff] }
  0xca   :  { %v756_v0 = vpop.eup %755  ;;  %604 = vst.msk [vmem:[#allocation2 + $0x48] sm:$0xff] %vm494_vm0, %v588_v29  ;;  %v462_v36 = vsel %vm461_vm12, %v1229_v23, %v460_v10  ;;  %v574_v23 = vld [vmem:[#allocation2 + $0x58] sm:$0xff]  ;;  %v478_v46 = vand.u32 2147483648, %v1255_v52  ;;  %v632_v44 = vadd.f32 %v631_v48, %v630_v62  ;;  %vm477_vm2 = vcmp.eq.f32.partialorder %v1255_v52, 0.0 }
  0xcb   :  { %v589_v38 = vadd.f32 %v573_v35, %v537_v55  ;;  %v465_v40 = vsel %vm463_vm13, %v464_v31, %v462_v36  ;;  %v467_v8 = vmul.f32 %v756_v0, %v1249_v30  ;;  %v635_v49 = vsel %vm494_vm0, %v617_v34, 0.0 }
  0xcc   :  { %506 = vst.msk [vmem:[#allocation6 + $0x58] sm:$0xff] %vm494_vm0, %v465_v40  ;;  %v716_v17 = vadd.f32 -1.0, %v465_v40  ;;  %v634_v58 = vadd.f32 %v633_v1, %v632_v44  ;;  %vm482_vm5 = vcmp.eq.f32.partialorder %v1266_v12, inf  ;;  %v485_v59 = vand.u32 2147483648, %v1266_v12  ;;  %v578_v40 = vld [vmem:[#allocation2 + $0x78] sm:$0xff] }
  0xcd   :  { %605 = vst.msk [vmem:[#allocation2 + $0x50] sm:$0xff] %vm494_vm0, %v589_v38  ;;  %v469_v5 = vsel %vm468_vm14, %v1249_v30, %v467_v8  ;;  %v637_v51 = vsel %vm494_vm0, %v618_v6, 0.0  ;;  %vm484_vm6 = vcmp.eq.f32.partialorder %v1266_v12, 0.0  ;;  %v639_v16 = vsel %vm494_vm0, %v619_v20, 0.0 }
  0xce   :  { %v758_v3 = vpop.eup %757  ;;  %v538_v42 = vmul.f32 %v716_v17, %v716_v17  ;;  %v472_v15 = vsel %vm470_vm15, %v471_v14, %v469_v5  ;;  %v636_v18 = vadd.f32 %v635_v49, %v634_v58  ;;  %v641_v2 = vsel %vm494_vm0, %v620_v4, 0.0 }
  0xcf   :  { %v474_v57 = vmul.f32 %v758_v3, %v1255_v52  ;;  %507 = vst.msk [vmem:[#allocation6 + $0x60] sm:$0xff] %vm494_vm0, %v472_v15  ;;  %v717_v45 = vadd.f32 -1.0, %v472_v15  ;;  %v643_v61 = vsel %vm494_vm0, %v621_v54, 0.0  ;;  %vm489_vm7 = vcmp.eq.f32.partialorder %v1282_v28, inf }
  0xd0   :  { %v590_v30 = vadd.f32 %v574_v23, %v538_v42  ;;  %v638_v19 = vadd.f32 %v637_v51, %v636_v18  ;;  %v492_v29 = vand.u32 2147483648, %v1282_v28  ;;  %vm491_vm8 = vcmp.eq.f32.partialorder %v1282_v28, 0.0 }
  0xd1   :  { %v476_v33 = vsel %vm475_vm1, %v1255_v52, %v474_v57  ;;  %v539_v50 = vmul.f32 %v717_v45, %v717_v45  ;;  %v623_v35 = vld [vmem:[#allocation2 + $0x48] sm:$0xff] }
  0xd2   :  { %v760_v47 = vpop.eup %759  ;;  %v479_v39 = vsel %vm477_vm2, %v478_v46, %v476_v33  ;;  %606 = vst.msk [vmem:[#allocation2 + $0x58] sm:$0xff] %vm494_vm0, %v590_v30  ;;  %v640_v26 = vadd.f32 %v639_v16, %v638_v19  ;;  %v647_v38 = vsel %vm494_vm0, %v623_v35, 0.0 }
  0xd3   :  { %v481_v53 = vmul.f32 %v760_v47, %v1266_v12  ;;  %508 = vst.msk [vmem:[#allocation6 + $0x68] sm:$0xff] %vm494_vm0, %v479_v39  ;;  %v718_v37 = vadd.f32 -1.0, %v479_v39  ;;  %v591_v52 = vadd.f32 %v575_v9, %v539_v50 }
  0xd4   :  { %v642_v10 = vadd.f32 %v641_v2, %v640_v26  ;;  %v624_v0 = vld [vmem:[#allocation2 + $0x50] sm:$0xff] }
  0xd5   :  { %v483_v63 = vsel %vm482_vm5, %v1266_v12, %v481_v53  ;;  %v540_v7 = vmul.f32 %v718_v37, %v718_v37  ;;  %607 = vst.msk [vmem:[#allocation2 + $0x60] sm:$0xff] %vm494_vm0, %v591_v52  ;;  %v622_v12 = vld [vmem:[#allocation2 + $0x40] sm:$0xff]  ;;  %v649_v14 = vsel %vm494_vm0, %v624_v0, 0.0 }
  0xd6   :  { %v486_v60 = vsel %vm484_vm6, %v485_v59, %v483_v63  ;;  %v762_v56 = vpop.eup %761  ;;  %v645_v31 = vsel %vm494_vm0, %v622_v12, 0.0  ;;  %v644_v36 = vadd.f32 %v643_v61, %v642_v10 }
  0xd7   :  { %509 = vst.msk [vmem:[#allocation6 + $0x70] sm:$0xff] %vm494_vm0, %v486_v60  ;;  %v719_v27 = vadd.f32 -1.0, %v486_v60  ;;  %v592_v13 = vadd.f32 %v576_v21, %v540_v7  ;;  %v488_v43 = vmul.f32 %v762_v56, %v1282_v28 }
  0xd8   :  { %v646_v41 = vadd.f32 %v645_v31, %v644_v36 }
  0xd9   :  { %v541_v24 = vmul.f32 %v719_v27, %v719_v27  ;;  %608 = vst.msk [vmem:[#allocation2 + $0x68] sm:$0xff] %vm494_vm0, %v592_v13  ;;  %v490_v55 = vsel %vm489_vm7, %v1282_v28, %v488_v43  ;;  %v625_v8 = vld [vmem:[#allocation2 + $0x58] sm:$0xff] }
  0xda   :  { %v493_v32 = vsel %vm491_vm8, %v492_v29, %v490_v55  ;;  %v648_v28 = vadd.f32 %v647_v38, %v646_v41  ;;  %v651_v23 = vsel %vm494_vm0, %v625_v8, 0.0 }
  0xdb   :  { %v593_v22 = vadd.f32 %v577_v25, %v541_v24  ;;  %510 = vst.msk [vmem:[#allocation6 + $0x78] sm:$0xff] %vm494_vm0, %v493_v32  ;;  %v720_v11 = vadd.f32 -1.0, %v493_v32 }
  0xdc   :  { %v626_v48 = vld [vmem:[#allocation2 + $0x60] sm:$0xff]  ;;  %v650_v34 = vadd.f32 %v649_v14, %v648_v28 }
  0xdd   :  { %609 = vst.msk [vmem:[#allocation2 + $0x70] sm:$0xff] %vm494_vm0, %v593_v22  ;;  %v542_v17 = vmul.f32 %v720_v11, %v720_v11  ;;  %v653_v62 = vsel %vm494_vm0, %v626_v48, 0.0 }
  0xde   :  { %v652_v15 = vadd.f32 %v651_v23, %v650_v34 }
  0xdf   :  { %v594_v3 = vadd.f32 %v578_v40, %v542_v17 }
  0xe0   :  { %v627_v5 = vld [vmem:[#allocation2 + $0x68] sm:$0xff]  ;;  %v654_v1 = vadd.f32 %v653_v62, %v652_v15 }
  0xe1   :  { %610 = vst.msk [vmem:[#allocation2 + $0x78] sm:$0xff] %vm494_vm0, %v594_v3  ;;  %v655_v57 = vsel %vm494_vm0, %v627_v5, 0.0 }
  0xe2   :  { %v656_v46 = vadd.f32 %v655_v57, %v654_v1 }
  0xe4   :  { %v628_v42 = vld [vmem:[#allocation2 + $0x70] sm:$0xff] }
  0xe5   :  { %v657_v45 = vsel %vm494_vm0, %v628_v42, 0.0 }
  0xe6   :  { %v658_v44 = vadd.f32 %v657_v45, %v656_v46 }
  0xe8   :  { %v629_v6 = vld [vmem:[#allocation2 + $0x78] sm:$0xff] }
  0xe9   :  { %v659_v47 = vsel %vm494_vm0, %v629_v6, 0.0 }
  0xea   :  { %v660_v30 = vadd.f32 %v659_v47, %v658_v44 }
  0xec   :  { %661 = vadd.xlane.f32.xlu0 %v660_v30 }
  0xed   :  { %794 = shalt.err (!%p791_p9)
}
  0xee   :  { %685 = dma.vmem_to_hbm [thread:$0]  %s680_s18, 2048, %s1347_s1, [#allocation5], %s830_s12, %s830_s12, %s831_s13   ;;  %vm672_vm0 = vcmask 0  }
  0xef   :  { %s836_s22 = smov [#allocation7]  }
  0xf0   :  { %s692_s23 = sshll.u32 %s836_s22, 4  ;;  %s693_s23 = int_to_ptr.vmem [resolvable:$true] %s692_s23 }
  0xf1   :  { %s803_s25 = scalar_lea.vmem %s693_s23, 16  ;;  %s807_s26 = scalar_lea.vmem %s693_s23, 32 }
  0xf2   :  { %p804_p10 = scmp.ne.s32.totalorder %s693_s23, %s803_s25  ;;  %p808_p11 = scmp.lt.s32.totalorder %s693_s23, %s693_s23 }
  0xf3   :  { %p809_p12 = scmp.lt.s32.totalorder %s807_s26, %s803_s25 }
  0xf5   :  { %p810_p13 = por %p809_p12, %p808_p11 }
  0xf7   :  { %p811_p0 = pnand %p810_p13, %p804_p10 }
 0x175   :  { %v662_v9 = vpop.xlane.xlu0 %661 }
 0x176   :  { %v663_v33 = vrot.slane %v662_v9, 4 }
 0x178   :  { %v664_v49 = vadd.f32 %v663_v33, %v662_v9 }
 0x17a   :  { %v665_v50 = vrot.slane %v664_v49, 2 }
 0x17c   :  { %v666_v39 = vadd.f32 %v665_v50, %v664_v49 }
 0x17e   :  { %v667_v53 = vrot.slane %v666_v39, 1 }
 0x180   :  { %v668_v20 = vadd.f32 %v667_v53, %v666_v39 }
 0x182   :  { %721 = vpush %v668_v20 }
 0x1b3   :  { %s722_s24 = spop %721 }
 0x1b4   :  { %v670_v58 = vstv %s722_s24 }
 0x1b5   :  { %673 = vst.msk [vmem:[#allocation7] sm:$0x1] %vm672_vm0, %v670_v58 }
 0x1b6   :  { %814 = shalt.err (!%p811_p0)
}
 0x1b7   :  { %695 = dma.vmem_to_hbm [thread:$0]  %s693_s23, 16, %s1348_s2, [#allocation8]  }
 0x1b8   :  { %825 = dma.done.wait [#allocation5], 2048  }
 0x1b9   :  { %826 = vsyncadd [#allocation5], 4294965248 }
 0x1ba   :  { %827 = dma.done.wait [#allocation8], 16  }
 0x1bb   :  { %828 = vsyncadd [#allocation8], 4294967280 }
 0x1bc   :  { %702 = vsyncpa [#allocation4], 1 }
 0x1bd   :  { %703 = vsyncpa [#allocation5], 1 }
 0x1be   :  { %704 = vsyncpa [#allocation8], 1 }

</bundles_post_ra>
